<compile_context>
chip_gen: v5e
topology: v5e:2x2
jax: 0.10.0
libtpu: 0.0.40
codegen_flags: <defaults>
</compile_context>

<pallas_src>
import functools

import jax
import jax.numpy as jnp
from jax.experimental import pallas as pl
from jax.experimental.pallas import tpu as pltpu

LANE = 128            # TPU lane width (last-dim tile)
SUBLANE = 8           # TPU sublane width (second-to-last-dim tile)
MAX_BATCH_TILE = 1024 # rows per grid step (can go to 2048 with vmem headroom)


def _round_up(n: int, m: int) -> int:
    return ((n + m - 1) // m) * m


def mlp_kernel(x_ref, w1_ref, b1_ref, w2_ref, b2_ref, o_ref, xp_ref):
    F = x_ref.shape[-1]   # true (unpadded) input feature count
    O = o_ref.shape[-1]   # true (unpadded) output feature count

    # Stage x into a lane-dense (bt, Fp) VMEM tile: zero-fill, then write the
    # real F columns.  Zeroing every step keeps this correct under any grid
    # ordering / TensorCore sharding; it is only bt/8 vreg stores per step.
    xp_ref[...] = jnp.zeros_like(xp_ref)
    xp_ref[:, :F] = x_ref[...]

    # Layer 1: lane-dense MXU matmul, f32 accumulation.
    h = jnp.dot(xp_ref[...], w1_ref[...], preferred_element_type=jnp.float32)
    h = h + b1_ref[...]                      # (1, Hp) broadcasts over rows
    # Sigmoid via tanh -> EUP slot (no f32 divide on the VALU). Stays in f32.
    h = 0.5 * (jnp.tanh(0.5 * h) + 1.0)

    # Layer 2.  Padded hidden lanes hold sigmoid(0) = 0.5; they contribute 0
    # only because prepare_params keeps rows >= H of w2_p EXACTLY zero.  Do
    # not re-pad / quantize w2_p with non-zero values without masking h here.
    out = jnp.dot(h.astype(w2_ref.dtype), w2_ref[...],
                  preferred_element_type=jnp.float32)
    out = out + b2_ref[...]                  # (1, Op) broadcasts over rows

    # Store only the real O columns; HBM output stays unpadded (no post-call
    # slice / extra HBM pass).
    o_ref[...] = out[:, :O].astype(o_ref.dtype)


def prepare_params(w1, b1, w2, b2, *, param_dtype=None):
    """One-time parameter prep (hoisted out of the per-call forward).

    Takes nn.Linear-layout params (weight [out, in], bias [out]), transposes
    to [in, out], zero-pads feature dims to 128 lanes, and reshapes biases to
    (1, N) rows.  Call ONCE at init; the jitted forward then does no per-call
    weight padding/copies.
    """
    H, F = w1.shape
    O = w2.shape[0]
    dtype = param_dtype or w1.dtype
    Fp = _round_up(F, LANE)
    Hp = _round_up(H, LANE)
    Op = _round_up(O, LANE)

    w1_p = jnp.zeros((Fp, Hp), dtype).at[:F, :H].set(w1.T.astype(dtype))
    b1_p = jnp.zeros((1, Hp), dtype).at[0, :H].set(b1.astype(dtype))
    # Rows >= H of w2_p MUST stay exactly zero: they cancel the sigmoid(0)=0.5
    # values sitting in the padded hidden lanes inside the kernel.
    w2_p = jnp.zeros((Hp, Op), dtype).at[:H, :O].set(w2.T.astype(dtype))
    b2_p = jnp.zeros((1, Op), dtype).at[0, :O].set(b2.astype(dtype))
    return w1_p, b1_p, w2_p, b2_p


@functools.partial(jax.jit, static_argnames=("out_features",))
def mlp_forward(x, w1_p, b1_p, w2_p, b2_p, *, out_features):
    """Fused two-layer MLP forward in a single Pallas kernel (padded params)."""
    B, F = x.shape
    Fp, Hp = w1_p.shape
    Op = w2_p.shape[1]
    O = out_features
    dtype = x.dtype

    # Large batch tile (multiple of 8) to amortize per-grid-step overhead;
    # cdiv grid -> at most one ragged last tile (rows independent, writes
    # masked), no wrapper-side batch padding.
    bt = min(MAX_BATCH_TILE, _round_up(B, SUBLANE))
    grid = (pl.cdiv(B, bt),)

    return pl.pallas_call(
        mlp_kernel,
        out_shape=jax.ShapeDtypeStruct((B, O), dtype),
        grid=grid,
        in_specs=[
            pl.BlockSpec((bt, F), lambda i: (i, 0)),    # x: unpadded, batch-tiled
            # Constant-index weights/biases: DMA'd once, resident in VMEM.
            pl.BlockSpec((Fp, Hp), lambda i: (0, 0)),   # w1 (padded at prep)
            pl.BlockSpec((1, Hp), lambda i: (0, 0)),    # b1
            pl.BlockSpec((Hp, Op), lambda i: (0, 0)),   # w2 (padded at prep)
            pl.BlockSpec((1, Op), lambda i: (0, 0)),    # b2
        ],
        out_specs=pl.BlockSpec((bt, O), lambda i: (i, 0)),  # unpadded output
        scratch_shapes=[pltpu.VMEM((bt, Fp), dtype)],       # lane-dense x stage
        compiler_params=pltpu.CompilerParams(
            dimension_semantics=("parallel",),
        ),
    )(x, w1_p, b1_p, w2_p, b2_p)


if __name__ == "__main__":
    # Forward implies a 2-D input [batch, input_size] (Iris-like: 4 feats, 3 classes).
    batch = 8
    input_size = 4
    hidden_size = 16
    output_size = 3

    key = jax.random.PRNGKey(0)
    kx, k1, k2, k3, k4 = jax.random.split(key, 5)
    x = jax.random.normal(kx, (batch, input_size), dtype=jnp.float32)

    # nn.Linear-style init: weight [out, in], bias [out], U(-1/sqrt(fan_in), +).
    bound1 = 1.0 / (input_size ** 0.5)
    bound2 = 1.0 / (hidden_size ** 0.5)
    w1 = jax.random.uniform(k1, (hidden_size, input_size), jnp.float32, -bound1, bound1)
    b1 = jax.random.uniform(k2, (hidden_size,), jnp.float32, -bound1, bound1)
    w2 = jax.random.uniform(k3, (output_size, hidden_size), jnp.float32, -bound2, bound2)
    b2 = jax.random.uniform(k4, (output_size,), jnp.float32, -bound2, bound2)

    # One-time prep (padding / transpose hoisted out of the per-call forward).
    params = prepare_params(w1, b1, w2, b2)

    out = mlp_forward(x, *params, out_features=output_size)
    out = jax.block_until_ready(out)

    # Pure-JAX reference of the PyTorch forward: sigmoid(x @ W1.T + b1) @ W2.T + b2
    h_ref = jax.nn.sigmoid(x @ w1.T + b1)
    ref = h_ref @ w2.T + b2
    assert out.shape == (batch, output_size)
    err = jnp.max(jnp.abs(out - ref))
    assert jnp.allclose(out, ref, atol=1e-5, rtol=1e-5), f"max abs err = {err}"

    print("KERNEL_OK")
</pallas_src>

<mosaic_0001>
module attributes {stable_mosaic.version = 11 : i64} {
  func.func @mlp_kernel(%arg0: i32, %arg1: memref<8x4xf32, #tpu.memory_space<vmem>>, %arg2: memref<128x128xf32, #tpu.memory_space<vmem>>, %arg3: memref<1x128xf32, #tpu.memory_space<vmem>>, %arg4: memref<128x128xf32, #tpu.memory_space<vmem>>, %arg5: memref<1x128xf32, #tpu.memory_space<vmem>>, %arg6: memref<8x3xf32, #tpu.memory_space<vmem>>, %arg7: memref<8x128xf32, #tpu.memory_space<vmem>>) attributes {dimension_semantics = [#tpu.dimension_semantics<parallel>], iteration_bounds = array<i64: 1>, scalar_prefetch = 0 : i64, scratch_operands = 1 : i64, tpu.core_type = #tpu.core_type<tc>, window_params = [{transform_indices = @transform_0, window_bounds = array<i64: 8, 4>}, {pipeline_mode = #tpu.pipeline_mode<synchronous>, transform_indices = @transform_1, window_bounds = array<i64: 128, 128>}, {pipeline_mode = #tpu.pipeline_mode<synchronous>, transform_indices = @transform_2, window_bounds = array<i64: 1, 128>}, {pipeline_mode = #tpu.pipeline_mode<synchronous>, transform_indices = @transform_3, window_bounds = array<i64: 128, 128>}, {pipeline_mode = #tpu.pipeline_mode<synchronous>, transform_indices = @transform_4, window_bounds = array<i64: 1, 128>}, {transform_indices = @transform_5, window_bounds = array<i64: 8, 3>}]} {
    %cst = arith.constant 0.000000e+00 : f32
    %0 = vector.broadcast %cst : f32 to vector<8x128xf32>
    %c0 = arith.constant 0 : index
    %c0_0 = arith.constant 0 : index
    %1 = vector.load %arg7[%c0, %c0_0] : memref<8x128xf32, #tpu.memory_space<vmem>>, vector<8x128xf32>
    tpu.vector_store %arg7[%c0, %c0_0], %0 {strides = array<i32>} : memref<8x128xf32, #tpu.memory_space<vmem>>, vector<8x128xf32>,
    %c0_1 = arith.constant 0 : index
    %c0_2 = arith.constant 0 : index
    %2 = vector.load %arg1[%c0_1, %c0_2] : memref<8x4xf32, #tpu.memory_space<vmem>>, vector<8x4xf32>
    %c0_3 = arith.constant 0 : index
    %c0_4 = arith.constant 0 : index
    %3 = vector.load %arg7[%c0_3, %c0_4] : memref<8x128xf32, #tpu.memory_space<vmem>>, vector<8x4xf32>
    tpu.vector_store %arg7[%c0_3, %c0_4], %2 {strides = array<i32>} : memref<8x128xf32, #tpu.memory_space<vmem>>, vector<8x4xf32>,
    %c0_5 = arith.constant 0 : index
    %c0_6 = arith.constant 0 : index
    %4 = vector.load %arg7[%c0_5, %c0_6] : memref<8x128xf32, #tpu.memory_space<vmem>>, vector<8x128xf32>
    %c0_7 = arith.constant 0 : index
    %c0_8 = arith.constant 0 : index
    %5 = vector.load %arg2[%c0_7, %c0_8] : memref<128x128xf32, #tpu.memory_space<vmem>>, vector<128x128xf32>
    %cst_9 = arith.constant dense<0.000000e+00> : vector<8x128xf32>
    %6 = tpu.matmul %4, %5, %cst_9 {dimension_numbers = #tpu.dot_dimension_numbers<[1], [0], [0], [1], [0, 0, 1, 1], [], []>} : vector<8x128xf32>, vector<128x128xf32>, vector<8x128xf32> -> vector<8x128xf32>
    %c0_10 = arith.constant 0 : index
    %c0_11 = arith.constant 0 : index
    %7 = vector.load %arg3[%c0_10, %c0_11] : memref<1x128xf32, #tpu.memory_space<vmem>>, vector<1x128xf32>
    %8 = vector.broadcast %7 : vector<1x128xf32> to vector<8x128xf32>
    %9 = arith.addf %6, %8 : vector<8x128xf32>
    %cst_12 = arith.constant 5.000000e-01 : f32
    %10 = vector.broadcast %cst_12 : f32 to vector<8x128xf32>
    %11 = arith.mulf %10, %9 : vector<8x128xf32>
    %12 = math.tanh %11 : vector<8x128xf32>
    %cst_13 = arith.constant 1.000000e+00 : f32
    %13 = vector.broadcast %cst_13 : f32 to vector<8x128xf32>
    %14 = arith.addf %12, %13 : vector<8x128xf32>
    %cst_14 = arith.constant 5.000000e-01 : f32
    %15 = vector.broadcast %cst_14 : f32 to vector<8x128xf32>
    %16 = arith.mulf %15, %14 : vector<8x128xf32>
    %c0_15 = arith.constant 0 : index
    %c0_16 = arith.constant 0 : index
    %17 = vector.load %arg4[%c0_15, %c0_16] : memref<128x128xf32, #tpu.memory_space<vmem>>, vector<128x128xf32>
    %cst_17 = arith.constant dense<0.000000e+00> : vector<8x128xf32>
    %18 = tpu.matmul %16, %17, %cst_17 {dimension_numbers = #tpu.dot_dimension_numbers<[1], [0], [0], [1], [0, 0, 1, 1], [], []>} : vector<8x128xf32>, vector<128x128xf32>, vector<8x128xf32> -> vector<8x128xf32>
    %c0_18 = arith.constant 0 : index
    %c0_19 = arith.constant 0 : index
    %19 = vector.load %arg5[%c0_18, %c0_19] : memref<1x128xf32, #tpu.memory_space<vmem>>, vector<1x128xf32>
    %20 = vector.broadcast %19 : vector<1x128xf32> to vector<8x128xf32>
    %21 = arith.addf %18, %20 : vector<8x128xf32>
    %22 = vector.extract_strided_slice %21 {offsets = [0, 0], sizes = [8, 3], strides = [1, 1]} : vector<8x128xf32> to vector<8x3xf32>
    %c0_20 = arith.constant 0 : index
    %c0_21 = arith.constant 0 : index
    %23 = vector.load %arg6[%c0_20, %c0_21] : memref<8x3xf32, #tpu.memory_space<vmem>>, vector<8x3xf32>
    tpu.vector_store %arg6[%c0_20, %c0_21], %22 {strides = array<i32>} : memref<8x3xf32, #tpu.memory_space<vmem>>, vector<8x3xf32>,
    return
  }
  func.func @transform_0(%arg0: i32) -> (i32, i32) {
    %c0_i32 = arith.constant 0 : i32
    %c0_i32_0 = arith.constant 0 : i32
    return %arg0, %c0_i32 : i32, i32
  }
  func.func @transform_1(%arg0: i32) -> (i32, i32) {
    %c0_i32 = arith.constant 0 : i32
    %c0_i32_0 = arith.constant 0 : i32
    %c0_i32_1 = arith.constant 0 : i32
    return %c0_i32, %c0_i32_0 : i32, i32
  }
  func.func @transform_2(%arg0: i32) -> (i32, i32) {
    %c0_i32 = arith.constant 0 : i32
    %c0_i32_0 = arith.constant 0 : i32
    %c0_i32_1 = arith.constant 0 : i32
    return %c0_i32, %c0_i32_0 : i32, i32
  }
  func.func @transform_3(%arg0: i32) -> (i32, i32) {
    %c0_i32 = arith.constant 0 : i32
    %c0_i32_0 = arith.constant 0 : i32
    %c0_i32_1 = arith.constant 0 : i32
    return %c0_i32, %c0_i32_0 : i32, i32
  }
  func.func @transform_4(%arg0: i32) -> (i32, i32) {
    %c0_i32 = arith.constant 0 : i32
    %c0_i32_0 = arith.constant 0 : i32
    %c0_i32_1 = arith.constant 0 : i32
    return %c0_i32, %c0_i32_0 : i32, i32
  }
  func.func @transform_5(%arg0: i32) -> (i32, i32) {
    %c0_i32 = arith.constant 0 : i32
    %c0_i32_0 = arith.constant 0 : i32
    return %arg0, %c0_i32 : i32, i32
  }
}

</mosaic_0001>

<bundles_post_ra>
// kernel: mlp_forward.1
= control target key start
LH: loop header
LB: loop body
LE: loop exit
PB: predicated region body
PF: predicated region fallthrough
CT: control target
= control target key end

     0   :  { %10 = vsyncpa [#allocation4], 0  ;;  %s263_s0 = inlined_call_operand.vmem [shape: f32[8,4], index: 0, kind: input, shape index: {}]   ;;  %s264_s1 = inlined_call_operand.hbm [shape: f32[128,128], index: 1, kind: input, shape index: {}]   ;;  %s265_s2 = inlined_call_operand.vmem [shape: f32[1,128], index: 2, kind: input, shape index: {}]   ;;  %s266_s3 = inlined_call_operand.hbm [shape: f32[128,128], index: 3, kind: input, shape index: {}]   ;;  %s267_s4 = inlined_call_operand.vmem [shape: f32[1,128], index: 4, kind: input, shape index: {}]   ;;  %s268_s5 = inlined_call_operand.vmem [shape: f32[8,3], index: 5, kind: output, shape index: {}]  }
   0x1   :  { %s18_s20 = sshll.u32 %s264_s1, 4  ;;  %s19_s20 = int_to_ptr.hbm [resolvable:$true] %s18_s20 }
   0x2   :  { %11 = vsyncpa [#allocation6], 0  ;;  %s210_s21 = smov [#allocation3]   ;;  %s33_s25 = sshll.u32 %s266_s3, 4  ;;  %s34_s25 = int_to_ptr.hbm [resolvable:$true] %s33_s25 }
   0x3   :  { %s20_s22 = sshll.u32 %s210_s21, 4  ;;  %s211_s26 = smov 128   ;;  %s21_s22 = int_to_ptr.vmem [resolvable:$true] %s20_s22 }
   0x4   :  { %s212_s27 = smov 8   ;;  %s213_s28 = smov [#allocation5]  }
   0x5   :  { %26 = dma.hbm_to_vmem [thread:$0]  %s19_s20, 2048, %s21_s22, [#allocation4], %s211_s26, %s211_s26, %s212_s27  }
   0x6   :  { %s35_s29 = sshll.u32 %s213_s28, 4  ;;  %s36_s29 = int_to_ptr.vmem [resolvable:$true] %s35_s29 }
   0x7   :  { %41 = dma.hbm_to_vmem [thread:$0]  %s34_s25, 2048, %s36_s29, [#allocation6], %s211_s26, %s211_s26, %s212_s27  }
   0x8   :  { %206 = dma.done.wait [#allocation4], 2048  }
   0x9   :  { %207 = vsyncadd [#allocation4], 4294965248 }
   0xa   :  { %208 = dma.done.wait [#allocation6], 2048  }
   0xb   :  { %209 = vsyncadd [#allocation6], 4294965248  ;;  %v214_v0 = vmov 0.0   ;;  %v72_v1 = vld [vmem:[#allocation3 + $0x78] sm:$0xff]  ;;  %v71_v2 = vld [vmem:[#allocation3 + $0x70] sm:$0xff]  ;;  %vm54_vm0 = vcmask 31744  }
   0xc   :  { %52 = vst [vmem:[#allocation2] sm:$0xff] %v214_v0  ;;  %77 = vmatpush.msra.mxu0 %v72_v1  ;;  %v70_v3 = vld [vmem:[#allocation3 + $0x68] sm:$0xff]  ;;  %v69_v4 = vld [vmem:[#allocation3 + $0x60] sm:$0xff]  ;;  %v53_v5 = vld [vmem:[%s263_s0] sm:$0xff]  ;;  %vm141_vm1 = vcmask 23552  }
   0xd   :  { %v116_v6 = vld [vmem:[#allocation5 + $0x78] sm:$0xff]  ;;  %55 = vst.msk [vmem:[#allocation2] sm:$0xff] %vm54_vm0, %v53_v5  ;;  %v115_v8 = vld [vmem:[#allocation5 + $0x70] sm:$0xff]  ;;  %v114_v9 = vld [vmem:[#allocation5 + $0x68] sm:$0xff] }
   0xe   :  { %78 = vmatpush.msra.mxu0 %v71_v2  ;;  %v68_v7 = vld [vmem:[#allocation3 + $0x58] sm:$0xff]  ;;  %121 = vmatpush.msra.mxu1 %v116_v6  ;;  %v67_v10 = vld [vmem:[#allocation3 + $0x50] sm:$0xff]  ;;  %v113_v11 = vld [vmem:[#allocation5 + $0x60] sm:$0xff] }
   0xf   :  { %v66_v12 = vld [vmem:[#allocation3 + $0x48] sm:$0xff]  ;;  %v112_v13 = vld [vmem:[#allocation5 + $0x58] sm:$0xff]  ;;  %v65_v14 = vld [vmem:[#allocation3 + $0x40] sm:$0xff] }
  0x10   :  { %79 = vmatpush.msra.mxu0 %v70_v3  ;;  %122 = vmatpush.msra.mxu1 %v115_v8  ;;  %v111_v15 = vld [vmem:[#allocation5 + $0x50] sm:$0xff]  ;;  %v64_v16 = vld [vmem:[#allocation3 + $0x38] sm:$0xff]  ;;  %v110_v17 = vld [vmem:[#allocation5 + $0x48] sm:$0xff] }
  0x11   :  { %v63_v18 = vld [vmem:[#allocation3 + $0x30] sm:$0xff]  ;;  %v109_v19 = vld [vmem:[#allocation5 + $0x40] sm:$0xff]  ;;  %v62_v20 = vld [vmem:[#allocation3 + $0x28] sm:$0xff] }
  0x12   :  { %80 = vmatpush.msra.mxu0 %v69_v4  ;;  %123 = vmatpush.msra.mxu1 %v114_v9  ;;  %v61_v21 = vld [vmem:[#allocation3 + $0x20] sm:$0xff]  ;;  %v60_v22 = vld [vmem:[#allocation3 + $0x18] sm:$0xff]  ;;  %v59_v23 = vld [vmem:[#allocation3 + $0x10] sm:$0xff] }
  0x13   :  { %v58_v24 = vld [vmem:[#allocation3 + $0x8] sm:$0xff]  ;;  %v57_v25 = vld [vmem:[#allocation3] sm:$0xff]  ;;  %v108_v27 = vld [vmem:[#allocation5 + $0x38] sm:$0xff] }
  0x14   :  { %81 = vmatpush.msra.mxu0 %v68_v7  ;;  %124 = vmatpush.msra.mxu1 %v113_v11  ;;  %v56_v26 = vld [vmem:[#allocation2] sm:$0xff]  ;;  %v107_v28 = vld [vmem:[#allocation5 + $0x30] sm:$0xff]  ;;  %v106_v29 = vld [vmem:[#allocation5 + $0x28] sm:$0xff] }
  0x15   :  { %v105_v30 = vld [vmem:[#allocation5 + $0x20] sm:$0xff]  ;;  %v104_v31 = vld [vmem:[#allocation5 + $0x18] sm:$0xff]  ;;  %v103_v32 = vld [vmem:[#allocation5 + $0x10] sm:$0xff] }
  0x16   :  { %82 = vmatpush.msra.mxu0 %v67_v10  ;;  %125 = vmatpush.msra.mxu1 %v112_v13  ;;  %v102_v33 = vld [vmem:[#allocation5 + $0x8] sm:$0xff]  ;;  %v101_v34 = vld [vmem:[#allocation5] sm:$0xff]  ;;  %v154_v35 = vld [vmem:[%s265_s2] ss:$0 sm:$0xff] }
  0x17   :  { %v155_v42 = vld [vmem:[%s267_s4] ss:$0 sm:$0xff] }
  0x18   :  { %83 = vmatpush.msra.mxu0 %v66_v12  ;;  %126 = vmatpush.msra.mxu1 %v111_v15 }
  0x1a   :  { %84 = vmatpush.msra.mxu0 %v65_v14  ;;  %127 = vmatpush.msra.mxu1 %v110_v17 }
  0x1c   :  { %85 = vmatpush.msra.mxu0 %v64_v16  ;;  %128 = vmatpush.msra.mxu1 %v109_v19 }
  0x1e   :  { %86 = vmatpush.msra.mxu0 %v63_v18  ;;  %129 = vmatpush.msra.mxu1 %v108_v27 }
  0x20   :  { %87 = vmatpush.msra.mxu0 %v62_v20  ;;  %130 = vmatpush.msra.mxu1 %v107_v28 }
  0x22   :  { %88 = vmatpush.msra.mxu0 %v61_v21  ;;  %131 = vmatpush.msra.mxu1 %v106_v29 }
  0x24   :  { %89 = vmatpush.msra.mxu0 %v60_v22  ;;  %132 = vmatpush.msra.mxu1 %v105_v30 }
  0x26   :  { %90 = vmatpush.msra.mxu0 %v59_v23  ;;  %133 = vmatpush.msra.mxu1 %v104_v31 }
  0x28   :  { %91 = vmatpush.msra.mxu0 %v58_v24  ;;  %134 = vmatpush.msra.mxu1 %v103_v32 }
  0x2a   :  { %92 = vmatpush.msra.mxu0 %v57_v25  ;;  %135 = vmatpush.msra.mxu1 %v102_v33 }
  0x2b   :  { %93 = vmatmul.f32.vlgmr.msra.gmra.mxu0 %v56_v26 }
  0x2c   :  { %136 = vmatpush.msra.mxu1 %v101_v34 }
  0xa8   :  { %v94_v36 = vpop.f32.mrf.mxu0 }
  0xa9   :  { %v95_v37 = vadd.f32 %v154_v35, %v94_v36 }
  0xab   :  { %v97_v38 = vmul.f32 0.5, %v95_v37 }
  0xad   :  { %156 = vtanh.f32 %v97_v38 }
  0xb3   :  { %v157_v39 = vpop.eup %156 }
  0xb4   :  { %v99_v40 = vadd.f32 1.0, %v157_v39 }
  0xb6   :  { %v100_v41 = vmul.f32 0.5, %v99_v40 }
  0xb8   :  { %137 = vmatmul.f32.vlgmr.msra.gmra.mxu1 %v100_v41 }
 0x135   :  { %v138_v43 = vpop.f32.mrf.mxu1 }
 0x136   :  { %v139_v44 = vadd.f32 %v155_v42, %v138_v43 }
 0x138   :  { %142 = vst.msk [vmem:[%s268_s5] sm:$0xff] %vm141_vm1, %v139_v44 }
 0x139   :  { %147 = vsyncpa [#allocation4], 1 }
 0x13a   :  { %148 = vsyncpa [#allocation6], 1 }

</bundles_post_ra>
